<compile_context>
chip_gen: v7x
topology: tpu7x:2x2x1
jax: 0.10.0
libtpu: 0.0.40
codegen_flags: <defaults>
</compile_context>

<pallas_src>
import jax
import jax.numpy as jnp
from jax.experimental import pallas as pl
from jax.experimental.pallas import tpu as pltpu


def _pad_kernel(x_ref, o_ref):
    # x_ref: (TILE_NC, H, W), o_ref: (TILE_NC, H+1, W+1)
    x = x_ref[...]
    t, h, w = x.shape
    zero_col = jnp.zeros((t, h, 1), x.dtype)
    zero_row = jnp.zeros((t, 1, w + 1), x.dtype)
    padded_w = jnp.concatenate([x, zero_col], axis=2)        # (T, H, W+1)
    # Single unmasked full-tile store (no zero-fill + overwrite double write).
    o_ref[...] = jnp.concatenate([padded_w, zero_row], axis=1)  # (T, H+1, W+1)


def pad_right_bottom(x, tile_nc=None):
    """Equivalent of F.pad(x, (0, 1, 0, 1), mode='constant', value=0) for NCHW x."""
    n, c, h, w = x.shape
    nc = n * c
    itemsize = jnp.dtype(x.dtype).itemsize

    if tile_nc is None:
        # Bytes moved per plane (input + padded output).
        plane_bytes = (h * w + (h + 1) * (w + 1)) * itemsize
        # Conservative per-buffer budget: 2x (double buffer) * blocks must fit
        # comfortably inside v7x's 32 MiB default scoped VMEM.
        budget_bytes = 12 * 1024 * 1024
        tile_nc = max(1, budget_bytes // (2 * plane_bytes))
        # Keep at least 2 grid steps so a parallel grid axis can be sharded
        # across v7x's two TensorCores (neutral on v5e / v6e).
        tile_nc = min(tile_nc, max(1, nc // 2))
        tile_nc = min(tile_nc, nc)

    grid_n = pl.cdiv(nc, tile_nc)
    nc_padded = grid_n * tile_nc

    x_flat = x.reshape(nc, h, w)
    if nc_padded != nc:
        # Tail block: pad the plane axis so every block is full, slice after.
        x_flat = jnp.pad(x_flat, ((0, nc_padded - nc), (0, 0), (0, 0)))

    cost = pl.CostEstimate(
        flops=0,
        transcendentals=0,
        bytes_accessed=(nc_padded * h * w + nc_padded * (h + 1) * (w + 1)) * itemsize,
    )

    out_flat = pl.pallas_call(
        _pad_kernel,
        out_shape=jax.ShapeDtypeStruct((nc_padded, h + 1, w + 1), x.dtype),
        grid=(grid_n,),
        in_specs=[pl.BlockSpec((tile_nc, h, w), lambda i: (i, 0, 0))],
        out_specs=pl.BlockSpec((tile_nc, h + 1, w + 1), lambda i: (i, 0, 0)),
        compiler_params=pltpu.CompilerParams(
            dimension_semantics=("parallel",),
            vmem_limit_bytes=32 * 1024 * 1024,
        ),
        cost_estimate=cost,
    )(x_flat)

    if nc_padded != nc:
        out_flat = out_flat[:nc]
    # TODO(synk): a fully lane-dense (flattened (H+1)*(W+1)) output store would
    # need an in-kernel reshape/relayout of the padded tile; skipped to keep
    # lowering robust at these small spatial sizes.
    return out_flat.reshape(n, c, h + 1, w + 1)


if __name__ == "__main__":
    key = jax.random.PRNGKey(0)
    # Small shapes consistent with a conv-style NCHW input.
    N, C, H, W = 2, 4, 16, 16
    x = jax.random.normal(key, (N, C, H, W), dtype=jnp.float32)

    out = pad_right_bottom(x)
    out = jax.block_until_ready(out)

    # Reference check against jnp.pad (same semantics as torch F.pad (0,1,0,1)).
    ref = jnp.pad(x, ((0, 0), (0, 0), (0, 1), (0, 1)), mode="constant",
                  constant_values=0.0)
    assert out.shape == (N, C, H + 1, W + 1), out.shape
    assert out.dtype == x.dtype
    assert jnp.allclose(out, ref), "mismatch vs reference pad"

    print("KERNEL_OK")
</pallas_src>

<mosaic_0001>
module attributes {stable_mosaic.version = 11 : i64} {
  func.func @_pad_kernel(%arg0: i32, %arg1: memref<4x16x16xf32, #tpu.memory_space<vmem>>, %arg2: memref<4x17x17xf32, #tpu.memory_space<vmem>>) attributes {dimension_semantics = [#tpu.dimension_semantics<parallel>], iteration_bounds = array<i64: 2>, scalar_prefetch = 0 : i64, scratch_operands = 0 : i64, tpu.core_type = #tpu.core_type<tc>, window_params = [{transform_indices = @transform_0, window_bounds = array<i64: 4, 16, 16>}, {transform_indices = @transform_1, window_bounds = array<i64: 4, 17, 17>}]} {
    %c0 = arith.constant 0 : index
    %c0_0 = arith.constant 0 : index
    %c0_1 = arith.constant 0 : index
    %0 = vector.load %arg1[%c0, %c0_0, %c0_1] : memref<4x16x16xf32, #tpu.memory_space<vmem>>, vector<4x16x16xf32>
    %cst = arith.constant 0.000000e+00 : f32
    %1 = vector.broadcast %cst : f32 to vector<4x16x1xf32>
    %cst_2 = arith.constant 0.000000e+00 : f32
    %2 = vector.broadcast %cst_2 : f32 to vector<4x1x17xf32>
    %3 = tpu.concatenate %0, %1 in 2 : vector<4x16x16xf32>, vector<4x16x1xf32> -> vector<4x16x17xf32>
    %4 = tpu.concatenate %3, %2 in 1 : vector<4x16x17xf32>, vector<4x1x17xf32> -> vector<4x17x17xf32>
    %c0_3 = arith.constant 0 : index
    %c0_4 = arith.constant 0 : index
    %c0_5 = arith.constant 0 : index
    %5 = vector.load %arg2[%c0_3, %c0_4, %c0_5] : memref<4x17x17xf32, #tpu.memory_space<vmem>>, vector<4x17x17xf32>
    tpu.vector_store %arg2[%c0_3, %c0_4, %c0_5], %4 {strides = array<i32>} : memref<4x17x17xf32, #tpu.memory_space<vmem>>, vector<4x17x17xf32>,
    return
  }
  func.func @transform_0(%arg0: i32) -> (i32, i32, i32) {
    %c0_i32 = arith.constant 0 : i32
    %c0_i32_0 = arith.constant 0 : i32
    %c0_i32_1 = arith.constant 0 : i32
    return %arg0, %c0_i32, %c0_i32_0 : i32, i32, i32
  }
  func.func @transform_1(%arg0: i32) -> (i32, i32, i32) {
    %c0_i32 = arith.constant 0 : i32
    %c0_i32_0 = arith.constant 0 : i32
    %c0_i32_1 = arith.constant 0 : i32
    return %arg0, %c0_i32, %c0_i32_0 : i32, i32, i32
  }
}

</mosaic_0001>

<bundles_post_ra>
// kernel: tpu_custom_call.1
= control target key start
LH: loop header
LB: loop body
LE: loop exit
PB: predicated region body
PF: predicated region fallthrough
CT: control target
= control target key end

     0   :  { %6 = vsyncpa [#allocation3], 0  ;;  %s508_s0 = inlined_call_operand.hbm [shape: f32[8,16,16], index: 0, kind: input, shape index: {}]   ;;  %s509_s1 = inlined_call_operand.vmem [shape: f32[8,17,17], index: 1, kind: output, shape index: {}]  }
   0x1   :  { %8 = vsyncpa [#allocation3 + $0x1], 0  ;;  %s381_s6 = smov 0   ;;  %s383_s7 = smov 0  }
   0x2   :  { %s385_s8 = smov 0   ;;  %s387_s9 = smov 0  }
   0x3 LB: > { %s242_s10 = sadd.s32 4294967295, %s365_s9   ;;  %s401_s11 = sadd.s32 1, %s365_s9   ;;  %s365_s9 = sphi %s387_s9, %s516_s9   ;;  %s361_s8 = sphi %s385_s8, %s515_s8   ;;  %s357_s7 = sphi %s383_s7, %s514_s7   ;;  %s353_s6 = sphi %s381_s6, %s513_s6  }
   0x4   : > { %s18_s12 = ssub.s32 %s365_s9, %s401_s11  ;;  %s21_s13 = sadd.s32 1, %s361_s8 }
   0x5   : > { %p19_p0 = scmp.eq.s32.totalorder %s18_s12, 0  ;;  %p28_p1 = scmp.ne.s32.totalorder %s361_s8, %s357_s7 }
   0x6   : > { %p29_p2 = scmp.eq.s32.totalorder %s365_s9, 0  ;;  %p34_p3 = scmp.ne.s32.totalorder %s357_s7, %s353_s6 }
   0x7   : > { %s411_s14 = scalar_select %p19_p0, %s361_s8, %s21_s13  }
   0x8   : > { %p30_p4 = por %p29_p2, %p28_p1  ;;  %p35_p5 = scmp.eq.s32.totalorder %s242_s10, 0 }
   0x9   : > { %p265_p6 = scmp.lt.s32.totalorder %s365_s9, 2  ;;  %s84_s16 = sand.u32 1, %s361_s8  }
   0xa   : > { %p416_p7 = por %p35_p5, %p34_p3  ;;  %s246_s17 = sshll.u32 %s84_s16, 6 }
   0xb   : > { %s257_s18 = sshll.u32 %s365_s9, 10  ;;  %s88_s22 = scalar_lea.vmem [#allocation2], %s246_s17 }
   0xc   : > { %s425_s21 = scalar_lea.hbm %s508_s0, %s257_s18  ;;  %s96_s23 = sshll.u32 %s88_s22, 4  ;;  %s427_s23 = int_to_ptr.vmem [resolvable:$true] %s96_s23 }
   0xd   : > { %p429_p8 = pnand %p265_p6, %p30_p4  ;;  %s434_s25 = scalar_lea.sflag [#allocation3], %s84_s16 }
   0xe   : > { %s301_s26 = scalar_lea.hbm %s425_s21, 1024  ;;  %s306_s29 = scalar_lea.hbm %s508_s0, 2048 }
   0xf   : > { %p302_p10 = scmp.ne.s32.totalorder %s425_s21, %s301_s26  ;;  %p303_p11 = pneg %p429_p8 }
  0x10   : > { %p307_p0 = scmp.lt.u32.totalorder %s425_s21, %s508_s0  ;;  %p308_p1 = scmp.lt.u32.totalorder %s306_s29, %s301_s26 }
  0x11   : > { %p304_p12 = pnand %p303_p11, %p302_p10  ;;  %p310_p3 = scmp.lt.u32.totalorder %s301_s26, %s425_s21 }
  0x12   : > { %p309_p2 = por %p308_p1, %p307_p0 }
  0x13   : > { %p305_p13 = pneg %p304_p12 }
  0x14   : > { %p311_p4 = por %p310_p3, %p309_p2 }
  0x16   : > { %p312_p5 = pnand %p311_p4, %p305_p13 }
  0x18   : > { %315 = shalt.err (!%p312_p5)
}
  0x19   : > { %s316_s3 = scalar_lea.vmem %s427_s23, 1024  ;;  %s367_s4 = smov [#allocation2]  }
  0x1a   : > { %p317_p6 = scmp.ne.s32.totalorder %s427_s23, %s316_s3  ;;  %s321_s5 = sshll.u32 %s367_s4, 4  ;;  %s322_s5 = int_to_ptr.vmem [resolvable:$false] %s321_s5 }
  0x1b   : > { %s323_s6 = scalar_lea.vmem %s322_s5, 2048  ;;  %p324_p9 = scmp.lt.s32.totalorder %s427_s23, %s322_s5 }
  0x1c   : > { %p319_p10 = pnand %p317_p6, %p303_p11  ;;  %p325_p0 = scmp.lt.s32.totalorder %s323_s6, %s316_s3 }
  0x1e   : > { %p320_p12 = pneg %p319_p10  ;;  %p326_p1 = por %p325_p0, %p324_p9 }
  0x20   : > { %p327_p2 = pnand %p326_p1, %p320_p12 }
  0x22   : > { %330 = shalt.err (!%p327_p2)
}
  0x23   : > { %s368_s12 = smov 128   ;;  %s369_s13 = smov 8  }
  0x24   : > { %264 = dma.hbm_to_vmem [thread:$0]  (!%p429_p8), %s425_s21, 1024, %s427_s23, %s434_s25, %s368_s12, %s368_s12, %s369_s13  }
  0x25   : > { %p104_p11 = scmp.lt.s32.totalorder %s365_s9, 3  ;;  %p512_p13 = scmp.ge.s32.totalorder %s365_s9, 1 }
  0x27   : > { %p105_p3 = pnand %p512_p13, %p104_p11 }
  0x28   : > { %s110_s16 = sand.u32 (!%p105_p3), 1, %s357_s7  }
  0x29   : > { %108 = sbr.rel (%p105_p3) target bundleno = 62 (0x3e), region = 24  ;;  %s251_s17 = sshll.u32 (!%p105_p3), %s110_s16, 6 }
  0x2a   : > { %s111_s18 = scalar_lea.sflag (!%p105_p3), [#allocation3], %s110_s16  ;;  %s114_s19 = scalar_lea.vmem (!%p105_p3), [#allocation2], %s251_s17 }
  0x30   : > { %348 = dma.done.wait (%p416_p7), %s111_s18, 1024  }
  0x31   : > { %350 = vsyncadd (%p416_p7), %s111_s18, 4294966272  ;;  %s252_s20 = sshll.u32 %s242_s10, 2  ;;  %vm150_vm0 = vcmask 130048   ;;  %vm162_vm1 = vcmask 131072   ;;  %vm159_vm2 = vcmask 138240   ;;  %v142_v0 = vld [vmem:[%s114_s19] sm:$0xff] }
  0x32   : > { %p136_p9 = scmp.lt.s32.totalorder %s252_s20, 7  ;;  %v143_v1 = vld [vmem:[%s114_s19 + $0x8] sm:$0xff]  ;;  %v144_v2 = vld [vmem:[%s114_s19 + $0x10] sm:$0xff]  ;;  %v151_v3 = vsel %vm150_vm0, %v142_v0, 0.0  ;;  %v370_v5 = vmov 0.0   ;;  %v145_v7 = vld [vmem:[%s114_s19 + $0x18] sm:$0xff] }
  0x33   : > { %v152_v4 = vsel %vm150_vm0, %v143_v1, 0.0  ;;  %v153_v6 = vsel %vm150_vm0, %v144_v2, 0.0  ;;  %v146_v8 = vld [vmem:[%s114_s19 + $0x20] sm:$0xff]  ;;  %v147_v9 = vld [vmem:[%s114_s19 + $0x28] sm:$0xff]  ;;  %v154_v10 = vsel %vm150_vm0, %v145_v7, 0.0  ;;  %v148_v13 = vld [vmem:[%s114_s19 + $0x30] sm:$0xff] }
  0x34   : > { %s518_s20 = smov (!%p136_p9, %s252_s20), 7  ;;  %v155_v11 = vsel %vm150_vm0, %v146_v8, 0.0  ;;  %v156_v12 = vsel %vm150_vm0, %v147_v9, 0.0  ;;  %v149_v14 = vld [vmem:[%s114_s19 + $0x38] sm:$0xff]  ;;  %v157_v15 = vsel %vm150_vm0, %v148_v13, 0.0 }
  0x35   : > { %s258_s21 = smul.u32 24, %s518_s20  ;;  %v158_v16 = vsel %vm150_vm0, %v149_v14, 0.0 }
  0x37   : > { %s140_s24 = scalar_lea.vmem %s509_s1, %s258_s21 }
  0x38   : > { %163 = vst.msk [vmem:[%s140_s24 + $0x10] sm:$0x1] %vm162_vm1, %v370_v5  ;;  %166 = vst.msk [vmem:[%s140_s24 + $0x28] sm:$0x1] %vm162_vm1, %v370_v5 }
  0x39   : > { %160 = vst.msk [vmem:[%s140_s24] sm:$0xff] %vm159_vm2, %v151_v3  ;;  %161 = vst.msk [vmem:[%s140_s24 + $0x8] sm:$0xff] %vm159_vm2, %v152_v4 }
  0x3a   : > { %164 = vst.msk [vmem:[%s140_s24 + $0x18] sm:$0xff] %vm159_vm2, %v153_v6  ;;  %165 = vst.msk [vmem:[%s140_s24 + $0x20] sm:$0xff] %vm159_vm2, %v154_v10 }
  0x3b   : > { %169 = vst.msk [vmem:[%s140_s24 + $0x40] sm:$0x1] %vm162_vm1, %v370_v5  ;;  %172 = vst.msk [vmem:[%s140_s24 + $0x58] sm:$0x1] %vm162_vm1, %v370_v5 }
  0x3c   : > { %167 = vst.msk [vmem:[%s140_s24 + $0x30] sm:$0xff] %vm159_vm2, %v155_v11  ;;  %168 = vst.msk [vmem:[%s140_s24 + $0x38] sm:$0xff] %vm159_vm2, %v156_v12 }
  0x3d   : > { %170 = vst.msk [vmem:[%s140_s24 + $0x48] sm:$0xff] %vm159_vm2, %v157_v15  ;;  %171 = vst.msk [vmem:[%s140_s24 + $0x50] sm:$0xff] %vm159_vm2, %v158_v16 }
  0x3e PF: > { %p11_p7 = scmp.ge.s32.totalorder %s401_s11, 4   ;;  %s513_s6 = smov %s357_s7 }
  0x3f   : > { %s514_s7 = smov %s361_s8  ;;  %s515_s8 = smov %s411_s14 }
  0x40   : > { %s516_s9 = smov %s401_s11  ;;  %13 = sbr.rel (!%p11_p7) target bundleno = 3 (0x3), region = 64 }
  0x47   :  { %197 = vsyncpa [#allocation3], 1 }
  0x48   :  { %199 = vsyncpa [#allocation3 + $0x1], 1 }

</bundles_post_ra>
